<compile_context>
chip_gen: v7x
topology: tpu7x:2x2x1
jax: 0.10.0
libtpu: 0.0.40
codegen_flags: <defaults>
</compile_context>

<pallas_src>
import jax
import jax.numpy as jnp
from jax.experimental import pallas as pl
from jax.experimental.pallas import tpu as pltpu


def _round_up(x, m):
    return ((x + m - 1) // m) * m


def autoencoder_kernel(
    x_ref,                     # [TB, D0]   f32 (cast to op dtype in-kernel)
    w1_ref, b1_ref,            # [D0, H] op, [1, H] f32       encoder Linear(D0 -> H)
    w23_ref, b23_ref,          # [H, OUTW] op, [1, OUTW] f32  folded encoder pair (cols >= D1 zero)
    w45_ref, b45_ref,          # [OUTW, H] op, [1, H] f32     folded decoder pair (rows >= D1 zero)
    w6s_ref, b6s_ref,          # [H, OUTW] op, [1, OUTW] f32  decoder Linear shifted to cols [D1, D1+D0)
    out_ref,                   # [TB, OUTW] f32  fused: cols [0,D1)=codes, [D1,D1+D0)=decoded
):
    # Cast input to the matmul operand dtype on the VPU (has slack); avoids a
    # host-side bf16 copy of x in HBM.
    x = x_ref[...].astype(w1_ref.dtype)

    # ---- Encoder ----
    h = jnp.dot(x, w1_ref[...], preferred_element_type=jnp.float32) + b1_ref[...]
    h = jnp.tanh(h)                                            # f32 elementwise (safe on v5e)
    c = jnp.dot(h.astype(w23_ref.dtype), w23_ref[...],
                preferred_element_type=jnp.float32) + b23_ref[...]
    codes = jnp.tanh(c)                                        # cols >= D1: tanh(0) = 0 exactly

    # ---- Decoder ----
    d = jnp.dot(codes.astype(w45_ref.dtype), w45_ref[...],
                preferred_element_type=jnp.float32) + b45_ref[...]
    d = jnp.tanh(d)
    dec = jnp.dot(d.astype(w6s_ref.dtype), w6s_ref[...],
                  preferred_element_type=jnp.float32) + b6s_ref[...]
    # dec is exactly 0 in cols [0, D1) (w6s/b6s are zero there), codes is exactly
    # 0 in cols [D1, OUTW), so one fused lane-dense store carries both outputs.
    out_ref[...] = (codes + dec).astype(out_ref.dtype)


def autoencoder_forward(x, params, *, tb=2048, use_bf16=True,
                        vmem_limit_bytes=48 * 1024 * 1024):
    """x: [B, D0] float32. params: dict of pre-transposed ([in, out]) weights/biases.

    Returns (codes [B, D1] f32, decoded [B, D0] f32).
    """
    f32 = jnp.float32
    B, D0 = x.shape
    H = params["w1"].shape[1]
    D1 = params["w3"].shape[1]

    # --- Fold the adjacent bias-only Linear pairs (in f32, once per call) ---
    w23 = params["w2"].astype(f32) @ params["w3"].astype(f32)
    b23 = params["b2"].astype(f32) @ params["w3"].astype(f32) + params["b3"].astype(f32)
    w45 = params["w4"].astype(f32) @ params["w5"].astype(f32)
    b45 = params["b4"].astype(f32) @ params["w5"].astype(f32) + params["b5"].astype(f32)

    # --- Fused lane-dense output layout: [codes | decoded | zero pad] ---
    OUTW = _round_up(D1 + D0, 128)
    w23p = jnp.pad(w23, ((0, 0), (0, OUTW - D1)))                 # codes in cols [0, D1)
    b23p = jnp.pad(b23, ((0, 0), (0, OUTW - D1)))                 # zero pad -> codes pad = tanh(0)=0
    w45p = jnp.pad(w45, ((0, OUTW - D1), (0, 0)))                 # extra input rows -> 0 (no effect)
    w6s = jnp.pad(params["w6"].astype(f32), ((0, 0), (D1, OUTW - D1 - D0)))  # decoded in cols [D1, D1+D0)
    b6s = jnp.pad(params["b6"].astype(f32), ((0, 0), (D1, OUTW - D1 - D0)))

    # --- Operand dtype: bf16 matmul operands, f32 accumulation / elementwise ---
    op_dtype = jnp.bfloat16 if use_bf16 else f32
    w1 = params["w1"].astype(op_dtype)
    w23p = w23p.astype(op_dtype)
    w45p = w45p.astype(op_dtype)
    w6s = w6s.astype(op_dtype)
    b1 = params["b1"].astype(f32)
    b23p = b23p.astype(f32)
    b45 = b45.astype(f32)
    b6s = b6s.astype(f32)

    # --- Batch tiling: large tiles to amortize per-step overhead, but keep
    #     >= 2 grid steps when possible so v7x can shard across its 2 TCs. ---
    pB16 = _round_up(B, 16)
    TB = min(tb, pB16)
    if pB16 >= 32:
        TB = min(TB, _round_up(-(-B // 2), 16))
    TB = max(TB, 16)
    pB = _round_up(B, TB)
    x_p = x if pB == B else jnp.pad(x, ((0, pB - B), (0, 0)))
    grid = (pB // TB,)

    # --- Cost estimate (after folding / fusing) ---
    weight_args = (w1, b1, w23p, b23p, w45p, b45, w6s, b6s)
    flops = 2 * pB * (D0 * H + H * OUTW + OUTW * H + H * OUTW)
    transcendentals = pB * (H + OUTW + H)
    bytes_accessed = (
        x_p.size * x_p.dtype.itemsize
        + sum(a.size * a.dtype.itemsize for a in weight_args)
        + pB * OUTW * 4
    )
    cost = pl.CostEstimate(
        flops=flops, transcendentals=transcendentals, bytes_accessed=bytes_accessed
    )

    def const_spec(a):
        # Whole-array, VMEM-resident across all grid steps.
        return pl.BlockSpec(a.shape, lambda i: (0, 0))

    out_p = pl.pallas_call(
        autoencoder_kernel,
        out_shape=jax.ShapeDtypeStruct((pB, OUTW), jnp.float32),
        grid=grid,
        in_specs=[
            pl.BlockSpec((TB, D0), lambda i: (i, 0)),   # x: tiled over batch (f32, cast in-kernel)
            const_spec(w1), const_spec(b1),
            const_spec(w23p), const_spec(b23p),
            const_spec(w45p), const_spec(b45),
            const_spec(w6s), const_spec(b6s),
        ],
        out_specs=pl.BlockSpec((TB, OUTW), lambda i: (i, 0)),
        compiler_params=pltpu.CompilerParams(
            dimension_semantics=("parallel",),          # batch sharded across v7x's 2 TCs
            vmem_limit_bytes=vmem_limit_bytes,          # conservative for v7x's 64 MiB VMEM
        ),
        cost_estimate=cost,
    )(x_p, *weight_args)

    codes = out_p[:B, :D1]
    decoded = out_p[:B, D1:D1 + D0]
    return codes, decoded


def init_params(key, dim):
    """Deterministic init matching PyTorch Linear shapes; weights stored [in, out]."""
    D0, D1 = dim
    H = D0 // 2

    def linear(k, fan_in, fan_out):
        kw, kb = jax.random.split(k)
        bound = 1.0 / jnp.sqrt(fan_in)
        w = jax.random.uniform(kw, (fan_in, fan_out), jnp.float32, -bound, bound)
        b = jax.random.uniform(kb, (1, fan_out), jnp.float32, -bound, bound)
        return w, b

    keys = jax.random.split(key, 6)
    p = {}
    # encoder
    p["w1"], p["b1"] = linear(keys[0], D0, H)
    p["w2"], p["b2"] = linear(keys[1], H, H)
    p["w3"], p["b3"] = linear(keys[2], H, D1)
    # decoder
    p["w4"], p["b4"] = linear(keys[3], D1, H)
    p["w5"], p["b5"] = linear(keys[4], H, H)
    p["w6"], p["b6"] = linear(keys[5], H, D0)
    return p


def reference_forward(x, p):
    h = jnp.tanh(x @ p["w1"] + p["b1"])
    h = h @ p["w2"] + p["b2"]
    codes = jnp.tanh(h @ p["w3"] + p["b3"])
    d = codes @ p["w4"] + p["b4"]
    d = jnp.tanh(d @ p["w5"] + p["b5"])
    decoded = d @ p["w6"] + p["b6"]
    return codes, decoded


if __name__ == "__main__":
    key = jax.random.PRNGKey(0)
    k_x, k_p = jax.random.split(key)

    dim = (64, 16)   # (D0 = input dim, D1 = code dim); hidden = D0 // 2 = 32
    B = 512          # TB capped to 256 -> 2 grid steps (exercises the batch grid)

    x = jax.random.normal(k_x, (B, dim[0]), dtype=jnp.float32)
    params = init_params(k_p, dim)

    ref_codes, ref_decoded = reference_forward(x, params)

    # f32 operand path: only fp differences vs. reference come from weight folding.
    codes32, decoded32 = jax.block_until_ready(
        autoencoder_forward(x, params, use_bf16=False)
    )
    assert codes32.shape == (B, dim[1]) and decoded32.shape == (B, dim[0])
    assert jnp.allclose(codes32, ref_codes, atol=1e-4, rtol=1e-4)
    assert jnp.allclose(decoded32, ref_decoded, atol=1e-4, rtol=1e-4)

    # bf16 operand path (default): bf16 MXU operands, f32 accumulation.
    codes16, decoded16 = jax.block_until_ready(
        autoencoder_forward(x, params, use_bf16=True)
    )
    assert codes16.shape == (B, dim[1]) and decoded16.shape == (B, dim[0])
    assert jnp.allclose(codes16, ref_codes, atol=5e-2, rtol=5e-2)
    assert jnp.allclose(decoded16, ref_decoded, atol=5e-2, rtol=5e-2)

    print("KERNEL_OK")
</pallas_src>

<mosaic_0001>
module attributes {stable_mosaic.version = 11 : i64} {
  func.func @autoencoder_kernel(%arg0: i32, %arg1: memref<256x64xf32, #tpu.memory_space<vmem>>, %arg2: memref<64x32xf32, #tpu.memory_space<vmem>>, %arg3: memref<1x32xf32, #tpu.memory_space<vmem>>, %arg4: memref<32x128xf32, #tpu.memory_space<vmem>>, %arg5: memref<1x128xf32, #tpu.memory_space<vmem>>, %arg6: memref<128x32xf32, #tpu.memory_space<vmem>>, %arg7: memref<1x32xf32, #tpu.memory_space<vmem>>, %arg8: memref<32x128xf32, #tpu.memory_space<vmem>>, %arg9: memref<1x128xf32, #tpu.memory_space<vmem>>, %arg10: memref<256x128xf32, #tpu.memory_space<vmem>>) attributes {dimension_semantics = [#tpu.dimension_semantics<parallel>], iteration_bounds = array<i64: 2>, scalar_prefetch = 0 : i64, scratch_operands = 0 : i64, tpu.core_type = #tpu.core_type<tc>, window_params = [{transform_indices = @transform_0, window_bounds = array<i64: 256, 64>}, {pipeline_mode = #tpu.pipeline_mode<synchronous>, transform_indices = @transform_1, window_bounds = array<i64: 64, 32>}, {pipeline_mode = #tpu.pipeline_mode<synchronous>, transform_indices = @transform_2, window_bounds = array<i64: 1, 32>}, {pipeline_mode = #tpu.pipeline_mode<synchronous>, transform_indices = @transform_3, window_bounds = array<i64: 32, 128>}, {pipeline_mode = #tpu.pipeline_mode<synchronous>, transform_indices = @transform_4, window_bounds = array<i64: 1, 128>}, {pipeline_mode = #tpu.pipeline_mode<synchronous>, transform_indices = @transform_5, window_bounds = array<i64: 128, 32>}, {pipeline_mode = #tpu.pipeline_mode<synchronous>, transform_indices = @transform_6, window_bounds = array<i64: 1, 32>}, {pipeline_mode = #tpu.pipeline_mode<synchronous>, transform_indices = @transform_7, window_bounds = array<i64: 32, 128>}, {pipeline_mode = #tpu.pipeline_mode<synchronous>, transform_indices = @transform_8, window_bounds = array<i64: 1, 128>}, {transform_indices = @transform_9, window_bounds = array<i64: 256, 128>}]} {
    %c0 = arith.constant 0 : index
    %c0_0 = arith.constant 0 : index
    %0 = vector.load %arg1[%c0, %c0_0] : memref<256x64xf32, #tpu.memory_space<vmem>>, vector<256x64xf32>
    %c0_1 = arith.constant 0 : index
    %c0_2 = arith.constant 0 : index
    %1 = vector.load %arg2[%c0_1, %c0_2] : memref<64x32xf32, #tpu.memory_space<vmem>>, vector<64x32xf32>
    %cst = arith.constant dense<0.000000e+00> : vector<256x32xf32>
    %2 = tpu.matmul %0, %1, %cst {dimension_numbers = #tpu.dot_dimension_numbers<[1], [0], [0], [1], [0, 0, 1, 1], [], []>} : vector<256x64xf32>, vector<64x32xf32>, vector<256x32xf32> -> vector<256x32xf32>
    %c0_3 = arith.constant 0 : index
    %c0_4 = arith.constant 0 : index
    %3 = vector.load %arg3[%c0_3, %c0_4] : memref<1x32xf32, #tpu.memory_space<vmem>>, vector<1x32xf32>
    %4 = vector.broadcast %3 : vector<1x32xf32> to vector<256x32xf32>
    %5 = arith.addf %2, %4 : vector<256x32xf32>
    %6 = math.tanh %5 : vector<256x32xf32>
    %c0_5 = arith.constant 0 : index
    %c0_6 = arith.constant 0 : index
    %7 = vector.load %arg4[%c0_5, %c0_6] : memref<32x128xf32, #tpu.memory_space<vmem>>, vector<32x128xf32>
    %cst_7 = arith.constant dense<0.000000e+00> : vector<256x128xf32>
    %8 = tpu.matmul %6, %7, %cst_7 {dimension_numbers = #tpu.dot_dimension_numbers<[1], [0], [0], [1], [0, 0, 1, 1], [], []>} : vector<256x32xf32>, vector<32x128xf32>, vector<256x128xf32> -> vector<256x128xf32>
    %c0_8 = arith.constant 0 : index
    %c0_9 = arith.constant 0 : index
    %9 = vector.load %arg5[%c0_8, %c0_9] : memref<1x128xf32, #tpu.memory_space<vmem>>, vector<1x128xf32>
    %10 = vector.broadcast %9 : vector<1x128xf32> to vector<256x128xf32>
    %11 = arith.addf %8, %10 : vector<256x128xf32>
    %12 = math.tanh %11 : vector<256x128xf32>
    %c0_10 = arith.constant 0 : index
    %c0_11 = arith.constant 0 : index
    %13 = vector.load %arg6[%c0_10, %c0_11] : memref<128x32xf32, #tpu.memory_space<vmem>>, vector<128x32xf32>
    %cst_12 = arith.constant dense<0.000000e+00> : vector<256x32xf32>
    %14 = tpu.matmul %12, %13, %cst_12 {dimension_numbers = #tpu.dot_dimension_numbers<[1], [0], [0], [1], [0, 0, 1, 1], [], []>} : vector<256x128xf32>, vector<128x32xf32>, vector<256x32xf32> -> vector<256x32xf32>
    %c0_13 = arith.constant 0 : index
    %c0_14 = arith.constant 0 : index
    %15 = vector.load %arg7[%c0_13, %c0_14] : memref<1x32xf32, #tpu.memory_space<vmem>>, vector<1x32xf32>
    %16 = vector.broadcast %15 : vector<1x32xf32> to vector<256x32xf32>
    %17 = arith.addf %14, %16 : vector<256x32xf32>
    %18 = math.tanh %17 : vector<256x32xf32>
    %c0_15 = arith.constant 0 : index
    %c0_16 = arith.constant 0 : index
    %19 = vector.load %arg8[%c0_15, %c0_16] : memref<32x128xf32, #tpu.memory_space<vmem>>, vector<32x128xf32>
    %cst_17 = arith.constant dense<0.000000e+00> : vector<256x128xf32>
    %20 = tpu.matmul %18, %19, %cst_17 {dimension_numbers = #tpu.dot_dimension_numbers<[1], [0], [0], [1], [0, 0, 1, 1], [], []>} : vector<256x32xf32>, vector<32x128xf32>, vector<256x128xf32> -> vector<256x128xf32>
    %c0_18 = arith.constant 0 : index
    %c0_19 = arith.constant 0 : index
    %21 = vector.load %arg9[%c0_18, %c0_19] : memref<1x128xf32, #tpu.memory_space<vmem>>, vector<1x128xf32>
    %22 = vector.broadcast %21 : vector<1x128xf32> to vector<256x128xf32>
    %23 = arith.addf %20, %22 : vector<256x128xf32>
    %24 = arith.addf %12, %23 : vector<256x128xf32>
    %c0_20 = arith.constant 0 : index
    %c0_21 = arith.constant 0 : index
    %25 = vector.load %arg10[%c0_20, %c0_21] : memref<256x128xf32, #tpu.memory_space<vmem>>, vector<256x128xf32>
    tpu.vector_store %arg10[%c0_20, %c0_21], %24 {strides = array<i32>} : memref<256x128xf32, #tpu.memory_space<vmem>>, vector<256x128xf32>,
    return
  }
  func.func @transform_0(%arg0: i32) -> (i32, i32) {
    %c0_i32 = arith.constant 0 : i32
    %c0_i32_0 = arith.constant 0 : i32
    return %arg0, %c0_i32 : i32, i32
  }
  func.func @transform_1(%arg0: i32) -> (i32, i32) {
    %c0_i32 = arith.constant 0 : i32
    %c0_i32_0 = arith.constant 0 : i32
    %c0_i32_1 = arith.constant 0 : i32
    return %c0_i32, %c0_i32_0 : i32, i32
  }
  func.func @transform_2(%arg0: i32) -> (i32, i32) {
    %c0_i32 = arith.constant 0 : i32
    %c0_i32_0 = arith.constant 0 : i32
    %c0_i32_1 = arith.constant 0 : i32
    return %c0_i32, %c0_i32_0 : i32, i32
  }
  func.func @transform_3(%arg0: i32) -> (i32, i32) {
    %c0_i32 = arith.constant 0 : i32
    %c0_i32_0 = arith.constant 0 : i32
    %c0_i32_1 = arith.constant 0 : i32
    return %c0_i32, %c0_i32_0 : i32, i32
  }
  func.func @transform_4(%arg0: i32) -> (i32, i32) {
    %c0_i32 = arith.constant 0 : i32
    %c0_i32_0 = arith.constant 0 : i32
    %c0_i32_1 = arith.constant 0 : i32
    return %c0_i32, %c0_i32_0 : i32, i32
  }
  func.func @transform_5(%arg0: i32) -> (i32, i32) {
    %c0_i32 = arith.constant 0 : i32
    %c0_i32_0 = arith.constant 0 : i32
    %c0_i32_1 = arith.constant 0 : i32
    return %c0_i32, %c0_i32_0 : i32, i32
  }
  func.func @transform_6(%arg0: i32) -> (i32, i32) {
    %c0_i32 = arith.constant 0 : i32
    %c0_i32_0 = arith.constant 0 : i32
    %c0_i32_1 = arith.constant 0 : i32
    return %c0_i32, %c0_i32_0 : i32, i32
  }
  func.func @transform_7(%arg0: i32) -> (i32, i32) {
    %c0_i32 = arith.constant 0 : i32
    %c0_i32_0 = arith.constant 0 : i32
    %c0_i32_1 = arith.constant 0 : i32
    return %c0_i32, %c0_i32_0 : i32, i32
  }
  func.func @transform_8(%arg0: i32) -> (i32, i32) {
    %c0_i32 = arith.constant 0 : i32
    %c0_i32_0 = arith.constant 0 : i32
    %c0_i32_1 = arith.constant 0 : i32
    return %c0_i32, %c0_i32_0 : i32, i32
  }
  func.func @transform_9(%arg0: i32) -> (i32, i32) {
    %c0_i32 = arith.constant 0 : i32
    %c0_i32_0 = arith.constant 0 : i32
    return %arg0, %c0_i32 : i32, i32
  }
}

</mosaic_0001>

<bundles_post_ra>
// kernel: tpu_custom_call.1
= control target key start
LH: loop header
LB: loop body
LE: loop exit
PB: predicated region body
PF: predicated region fallthrough
CT: control target
= control target key end

     0   :  { %14 = vsyncpa [#allocation3], 0  ;;  %s3442_s0 = inlined_call_operand.vmem [shape: f32[512,64], index: 0, kind: input, shape index: {}]   ;;  %s3443_s1 = inlined_call_operand.vmem [shape: f32[64,32], index: 1, kind: input, shape index: {}]   ;;  %s3444_s2 = inlined_call_operand.vmem [shape: f32[1,32], index: 2, kind: input, shape index: {}]   ;;  %s3445_s3 = inlined_call_operand.vmem [shape: f32[32,128], index: 3, kind: input, shape index: {}]   ;;  %s3446_s4 = inlined_call_operand.vmem [shape: f32[1,128], index: 4, kind: input, shape index: {}]   ;;  %s3447_s5 = inlined_call_operand.vmem [shape: f32[128,32], index: 5, kind: input, shape index: {}]   ;;  %s3448_s6 = inlined_call_operand.vmem [shape: f32[1,32], index: 6, kind: input, shape index: {}]   ;;  %s3449_s7 = inlined_call_operand.vmem [shape: f32[32,128], index: 7, kind: input, shape index: {}]   ;;  %s3450_s8 = inlined_call_operand.vmem [shape: f32[1,128], index: 8, kind: input, shape index: {}]   ;;  %s3451_s9 = inlined_call_operand.hbm [shape: f32[512,128], index: 9, kind: output, shape index: {}]  }
   0x1   :  { %16 = vsyncpa [#allocation3 + $0x1], 0  ;;  %s2799_s30 = smov 0   ;;  %s2801_s10 = smov 0  }
   0x2   :  { %s2803_s11 = smov 0   ;;  %s2805_s12 = smov 0  }
   0x3 LB: > { %s2820_s13 = sadd.s32 4294967295, %s2744_s12   ;;  %s1852_s14 = sadd.s32 4294967294, %s2744_s12   ;;  %s2744_s12 = sphi %s2805_s12, %s3457_s12   ;;  %s2740_s11 = sphi %s2803_s11, %s3456_s11   ;;  %s2736_s10 = sphi %s2801_s10, %s3455_s10   ;;  %s2732_s30 = sphi %s2799_s30, %s3454_s30  }
   0x4   : > { %s2824_s15 = sadd.s32 1, %s2744_s12   ;;  %s223_s16 = sadd.s32 1, %s2740_s11 }
   0x5   : > { %s220_s17 = ssub.s32 %s2744_s12, %s2824_s15  ;;  %p233_p0 = scmp.ne.s32.totalorder %s2740_s11, %s2736_s10 }
   0x6   : > { %p221_p1 = scmp.eq.s32.totalorder %s220_s17, 0  ;;  %p234_p2 = scmp.eq.s32.totalorder %s2820_s13, 1 }
   0x7   : > { %p239_p3 = scmp.ne.s32.totalorder %s2736_s10, %s2732_s30  ;;  %p240_p4 = scmp.eq.s32.totalorder %s1852_s14, 1 }
   0x8   : > { %s2835_s18 = scalar_select %p221_p1, %s2740_s11, %s223_s16  }
   0x9   : > { %p2837_p5 = por %p234_p2, %p233_p0  ;;  %p2841_p6 = por %p240_p4, %p239_p3 }
   0xa   : > { %p1855_p7 = scmp.ge.s32.totalorder %s2744_s12, 1  ;;  %p291_p8 = scmp.lt.s32.totalorder %s2744_s12, 3 }
   0xc   : > { %p292_p9 = pnand %p1855_p7, %p291_p8 }
   0xd   : > { %v366_v0 = vld [vmem:[%s3443_s1] sm:$0xff] (!%p292_p9)  ;;  %v367_v1 = vld [vmem:[%s3443_s1 + $0x8] sm:$0xff] (!%p292_p9)  ;;  %v368_v2 = vld [vmem:[%s3443_s1 + $0x10] sm:$0xff] (!%p292_p9)  ;;  %s1857_s27 = sshll.u32 (!%p292_p9), %s2820_s13, 5  ;;  %vm381_vm0 = vcmask (!%p292_p9), 523264   ;;  %vm746_vm1 = vcmask (!%p292_p9), 261120  }
   0xe   : > { %295 = sbr.rel (%p292_p9) target bundleno = 1005 (0x3ed), region = 56  ;;  %v2381_v3 = vpack.c.bf16 (!%p292_p9), %v367_v1, %v366_v0  ;;  %v369_v4 = vld [vmem:[%s3443_s1 + $0x18] sm:$0xff] (!%p292_p9)  ;;  %p328_p10 = scmp.lt.s32.totalorder (!%p292_p9), %s1857_s27, 63  ;;  %v370_v6 = vld [vmem:[%s3443_s1 + $0x20] sm:$0xff] (!%p292_p9)  ;;  %v371_v7 = vld [vmem:[%s3443_s1 + $0x28] sm:$0xff] (!%p292_p9) }
   0xf   : > { %v2385_v5 = vpack.c.bf16 (!%p292_p9), %v369_v4, %v368_v2  ;;  %v2389_v8 = vpack.c.bf16 (!%p292_p9), %v371_v7, %v370_v6  ;;  %v372_v9 = vld [vmem:[%s3443_s1 + $0x30] sm:$0xff] (!%p292_p9)  ;;  %v373_v10 = vld [vmem:[%s3443_s1 + $0x38] sm:$0xff] (!%p292_p9)  ;;  %v735_v44 = vld [vmem:[%s3445_s3] sm:$0xff] (!%p292_p9)  ;;  %s324_s24 = sand.u32 (!%p292_p9), 1, %s2736_s10   ;;  %s2746_s23 = smov (!%p292_p9), [#allocation2]  }
  0x10   : > { %2382 = vmatprep.subr.bf16.mxu0 (!%p292_p9), %v2381_v3  ;;  %v2393_v12 = vpack.c.bf16 (!%p292_p9), %v373_v10, %v372_v9  ;;  %v736_v45 = vld [vmem:[%s3445_s3 + $0x8] sm:$0xff] (!%p292_p9)  ;;  %v737_v47 = vld [vmem:[%s3445_s3 + $0x10] sm:$0xff] (!%p292_p9)  ;;  %v738_v48 = vld [vmem:[%s3445_s3 + $0x18] sm:$0xff] (!%p292_p9)  ;;  %s1856_s28 = sshll.u32 (!%p292_p9), %s324_s24, 8  ;;  %s2686_s25 = sshll.u32 (!%p292_p9), %s2746_s23, 4  ;;  %s2687_s25 = int_to_ptr.vmem [resolvable:$false] %s2686_s25 }
  0x11   : > { %2384 = vmatpush3.bf16.msra.mxu0 (!%p292_p9), %v2381_v3  ;;  %v2397_v46 = vpack.c.bf16 (!%p292_p9), %v736_v45, %v735_v44  ;;  %v2401_v49 = vpack.c.bf16 (!%p292_p9), %v738_v48, %v737_v47  ;;  %v1100_v50 = vld [vmem:[%s3447_s5] sm:$0xff] (!%p292_p9)  ;;  %v1101_v51 = vld [vmem:[%s3447_s5 + $0x8] sm:$0xff] (!%p292_p9)  ;;  %v1102_v2 = vld [vmem:[%s3447_s5 + $0x10] sm:$0xff] (!%p292_p9)  ;;  %s3296_s29 = scalar_lea.vmem (!%p292_p9), [#allocation2], %s1856_s28  ;;  %s2688_s26 = scalar_lea.vmem (!%p292_p9), %s2687_s25, 8192 }
  0x12   : > { %2386 = vmatprep.subr.bf16.mxu0 (!%p292_p9), %v2385_v5  ;;  %v2405_v52 = vpack.c.bf16 (!%p292_p9), %v1101_v51, %v1100_v50  ;;  %v2962_v53 = vld [vmem:[%s3444_s2] ss:$0 sm:$0xff] (!%p292_p9)  ;;  %v1103_v3 = vld [vmem:[%s3447_s5 + $0x18] sm:$0xff] (!%p292_p9)  ;;  %v1113_v48 = vld [vmem:[%s3447_s5 + $0x68] sm:$0xff] (!%p292_p9) }
  0x13   : > { %2398 = vmatprep.subr.bf16.mxu1 (!%p292_p9), %v2397_v46  ;;  %v2409_v9 = vpack.c.bf16 (!%p292_p9), %v1103_v3, %v1102_v2  ;;  %v1112_v47 = vld [vmem:[%s3447_s5 + $0x60] sm:$0xff] (!%p292_p9) }
  0x14   : > { %2400 = vmatpush3.bf16.msra.mxu1 (!%p292_p9), %v2397_v46 }
  0x15   : > { %s3459_s27 = smov (!%p328_p10, %s1857_s27), 63  ;;  %2388 = vmatpush3.bf16.msra.mxu0 %v2385_v5  ;;  %2402 = vmatprep.subr.bf16.mxu1 %v2401_v49 }
  0x16   : > { %s1858_s22 = sshll.u32 %s3459_s27, 3  ;;  %2390 = vmatprep.subr.bf16.mxu0 %v2389_v8  ;;  %s1790_s27 = sshll.u32 %s3296_s29, 4  ;;  %s3394_s27 = int_to_ptr.vmem [resolvable:$true] %s1790_s27 }
  0x17   : > { %s2875_s14 = scalar_lea.vmem %s3442_s0, %s1858_s22  ;;  %s2682_s22 = scalar_lea.vmem %s3394_s27, 4096 }
  0x18   : > { %v334_v11 = vld [vmem:[%s2875_s14] sm:$0xff]  ;;  %v335_v13 = vld [vmem:[%s2875_s14 + $0x8] sm:$0xff]  ;;  %v336_v14 = vld [vmem:[%s2875_s14 + $0x10] sm:$0xff]  ;;  %2404 = vmatpush3.bf16.msra.mxu1 %v2401_v49  ;;  %p2683_p11 = scmp.ne.s32.totalorder %s3394_s27, %s2682_s22  ;;  %p2689_p0 = scmp.lt.s32.totalorder %s3394_s27, %s2687_s25 }
  0x19   : > { %2141 = vmatprep.mubr.msk.f32.mxu0 %vm381_vm0, %v334_v11  ;;  %2392 = vmatpush3.bf16.msra.mxu0 %v2389_v8  ;;  %v337_v15 = vld [vmem:[%s2875_s14 + $0x18] sm:$0xff]  ;;  %v338_v16 = vld [vmem:[%s2875_s14 + $0x20] sm:$0xff]  ;;  %v339_v17 = vld [vmem:[%s2875_s14 + $0x28] sm:$0xff]  ;;  %p2690_p1 = scmp.lt.s32.totalorder %s2688_s26, %s2682_s22 }
  0x1a   : > { %2394 = vmatprep.subr.bf16.mxu0 %v2393_v12  ;;  %v340_v18 = vld [vmem:[%s2875_s14 + $0x30] sm:$0xff]  ;;  %v341_v19 = vld [vmem:[%s2875_s14 + $0x38] sm:$0xff]  ;;  %v342_v20 = vld [vmem:[%s2875_s14 + $0x40] sm:$0xff]  ;;  %2406 = vmatprep.subr.bf16.mxu1 %v2405_v52  ;;  %p2684_p12 = pnand %p2683_p11, %p2837_p5 }
  0x1b   : > { %v343_v21 = vld [vmem:[%s2875_s14 + $0x48] sm:$0xff]  ;;  %v344_v22 = vld [vmem:[%s2875_s14 + $0x50] sm:$0xff]  ;;  %v345_v23 = vld [vmem:[%s2875_s14 + $0x58] sm:$0xff]  ;;  %p2691_p2 = por %p2690_p1, %p2689_p0 }
  0x1c   : > { %v346_v24 = vld [vmem:[%s2875_s14 + $0x60] sm:$0xff]  ;;  %v347_v25 = vld [vmem:[%s2875_s14 + $0x68] sm:$0xff]  ;;  %v348_v26 = vld [vmem:[%s2875_s14 + $0x70] sm:$0xff]  ;;  %p2685_p13 = pneg %p2684_p12 }
  0x1d   : > { %2396 = vmatpush3.bf16.msra.mxu0 %v2393_v12  ;;  %v349_v27 = vld [vmem:[%s2875_s14 + $0x78] sm:$0xff]  ;;  %v350_v28 = vld [vmem:[%s2875_s14 + $0x80] sm:$0xff]  ;;  %v351_v29 = vld [vmem:[%s2875_s14 + $0x88] sm:$0xff] }
  0x1e   : > { %v352_v30 = vld [vmem:[%s2875_s14 + $0x90] sm:$0xff]  ;;  %v353_v31 = vld [vmem:[%s2875_s14 + $0x98] sm:$0xff]  ;;  %v354_v32 = vld [vmem:[%s2875_s14 + $0xa0] sm:$0xff]  ;;  %p2692_p3 = pnand %p2691_p2, %p2685_p13 }
  0x1f   : > { %v355_v33 = vld [vmem:[%s2875_s14 + $0xa8] sm:$0xff]  ;;  %v356_v34 = vld [vmem:[%s2875_s14 + $0xb0] sm:$0xff]  ;;  %v357_v35 = vld [vmem:[%s2875_s14 + $0xb8] sm:$0xff] }
  0x20   : > { %2142 = vmatmul.mubr.msk.f32.vlgmr.msra.gmra.mrb[0].mxu0 %vm381_vm0, %v335_v13  ;;  %v358_v36 = vld [vmem:[%s2875_s14 + $0xc0] sm:$0xff]  ;;  %v359_v37 = vld [vmem:[%s2875_s14 + $0xc8] sm:$0xff]  ;;  %v360_v38 = vld [vmem:[%s2875_s14 + $0xd0] sm:$0xff] }
  0x21   : > { %2144 = vmatprep.mubr.msk.f32.mxu0 %vm381_vm0, %v336_v14  ;;  %v361_v39 = vld [vmem:[%s2875_s14 + $0xd8] sm:$0xff]  ;;  %v362_v40 = vld [vmem:[%s2875_s14 + $0xe0] sm:$0xff]  ;;  %v363_v41 = vld [vmem:[%s2875_s14 + $0xe8] sm:$0xff] }
  0x22   : > { %v364_v42 = vld [vmem:[%s2875_s14 + $0xf0] sm:$0xff]  ;;  %v365_v43 = vld [vmem:[%s2875_s14 + $0xf8] sm:$0xff]  ;;  %v1104_v11 = vld [vmem:[%s3447_s5 + $0x20] sm:$0xff]  ;;  %s1964_s14 = sshll.u32 %s2820_s13, 12  ;;  %s3401_s13 = scalar_lea.sflag [#allocation3], %s324_s24 }
  0x23   : > { %v1105_v12 = vld [vmem:[%s3447_s5 + $0x28] sm:$0xff]  ;;  %s3392_s21 = scalar_lea.hbm %s3451_s9, %s1964_s14 }
  0x24   : > { %2145 = vmatmul.mubr.msk.f32.gmra.mrb[2].mxu0 %vm381_vm0, %v337_v15 }
  0x25   : > { %2147 = vmatprep.mubr.msk.f32.mxu0 %vm381_vm0, %v338_v16 }
  0x28   : > { %2148 = vmatmul.mubr.msk.f32.gmra.mrb[4].mxu0 %vm381_vm0, %v339_v17 }
  0x29   : > { %2150 = vmatprep.mubr.msk.f32.mxu0 %vm381_vm0, %v340_v18  ;;  %v2413_v18 = vpack.c.bf16 %v1105_v12, %v1104_v11 }
  0x2c   : > { %2151 = vmatmul.mubr.msk.f32.gmra.mrb[6].mxu0 %vm381_vm0, %v341_v19 }
  0x2d   : > { %2153 = vmatprep.mubr.msk.f32.mxu0 %vm381_vm0, %v342_v20  ;;  %v1106_v20 = vld [vmem:[%s3447_s5 + $0x30] sm:$0xff] }
  0x30   : > { %2154 = vmatmul.mubr.msk.f32.gmra.mrb[8].mxu0 %vm381_vm0, %v343_v21  ;;  %v1107_v21 = vld [vmem:[%s3447_s5 + $0x38] sm:$0xff] }
  0x31   : > { %2156 = vmatprep.mubr.msk.f32.mxu0 %vm381_vm0, %v344_v22 }
  0x34   : > { %2157 = vmatmul.mubr.msk.f32.gmra.mrb[10].mxu0 %vm381_vm0, %v345_v23 }
  0x35   : > { %2159 = vmatprep.mubr.msk.f32.mxu0 %vm381_vm0, %v346_v24 }
  0x38   : > { %2160 = vmatmul.mubr.msk.f32.gmra.mrb[12].mxu0 %vm381_vm0, %v347_v25 }
  0x39   : > { %2162 = vmatprep.mubr.msk.f32.mxu0 %vm381_vm0, %v348_v26 }
  0x3c   : > { %2163 = vmatmul.mubr.msk.f32.gmra.mrb[14].mxu0 %vm381_vm0, %v349_v27  ;;  %v2417_v27 = vpack.c.bf16 %v1107_v21, %v1106_v20 }
  0x3d   : > { %2165 = vmatprep.mubr.msk.f32.mxu0 %vm381_vm0, %v350_v28 }
  0x40   : > { %2166 = vmatmul.mubr.msk.f32.gmra.mrb[16].mxu0 %vm381_vm0, %v351_v29  ;;  %v1108_v29 = vld [vmem:[%s3447_s5 + $0x40] sm:$0xff] }
  0x41   : > { %2168 = vmatprep.mubr.msk.f32.mxu0 %vm381_vm0, %v352_v30  ;;  %v1109_v30 = vld [vmem:[%s3447_s5 + $0x48] sm:$0xff] }
  0x44   : > { %2169 = vmatmul.mubr.msk.f32.gmra.mrb[18].mxu0 %vm381_vm0, %v353_v31 }
  0x45   : > { %2171 = vmatprep.mubr.msk.f32.mxu0 %vm381_vm0, %v354_v32 }
  0x48   : > { %2172 = vmatmul.mubr.msk.f32.gmra.mrb[20].mxu0 %vm381_vm0, %v355_v33 }
  0x49   : > { %2174 = vmatprep.mubr.msk.f32.mxu0 %vm381_vm0, %v356_v34 }
  0x4c   : > { %2175 = vmatmul.mubr.msk.f32.gmra.mrb[22].mxu0 %vm381_vm0, %v357_v35 }
  0x4d   : > { %2177 = vmatprep.mubr.msk.f32.mxu0 %vm381_vm0, %v358_v36  ;;  %v2421_v36 = vpack.c.bf16 %v1109_v30, %v1108_v29 }
  0x50   : > { %2178 = vmatmul.mubr.msk.f32.gmra.mrb[24].mxu0 %vm381_vm0, %v359_v37 }
  0x51   : > { %2180 = vmatprep.mubr.msk.f32.mxu0 %vm381_vm0, %v360_v38  ;;  %v1110_v38 = vld [vmem:[%s3447_s5 + $0x50] sm:$0xff] }
  0x54   : > { %2181 = vmatmul.mubr.msk.f32.gmra.mrb[26].mxu0 %vm381_vm0, %v361_v39  ;;  %v1111_v39 = vld [vmem:[%s3447_s5 + $0x58] sm:$0xff] }
  0x55   : > { %2183 = vmatprep.mubr.msk.f32.mxu0 %vm381_vm0, %v362_v40  ;;  %v2425_v45 = vpack.c.bf16 %v1111_v39, %v1110_v38 }
  0x58   : > { %2184 = vmatmul.mubr.msk.f32.gmra.mrb[28].mxu0 %vm381_vm0, %v363_v41 }
  0x59   : > { %2186 = vmatprep.mubr.msk.f32.mxu0 %vm381_vm0, %v364_v42 }
  0x5c   : > { %2187 = vmatmul.mubr.msk.f32.gmra.mrb[30].mxu0 %vm381_vm0, %v365_v43 }
  0xf3   : > { %v2143_v54 = vpop.f32.mrb[0].mxu0 }
  0xf4   : > { %v550_v55 = vadd.f32 %v2143_v54, %v2962_v53  ;;  %v544_v56 = vpop.f32.mrb[1].mxu0 }
  0xf5   : > { %v545_v57 = vadd.f32 %v2962_v53, %v544_v56 }
  0xf7   : > { %2490 = vtanh.f32 %v545_v57  ;;  %v2146_v58 = vpop.f32.mrb[2].mxu0 }
  0xf8   : > { %2492 = vtanh.f32 %v550_v55  ;;  %v560_v59 = vadd.f32 %v2146_v58, %v2962_v53  ;;  %v554_v60 = vpop.f32.mrb[3].mxu0  ;;  %v2429_v55 = vpack.c.bf16 %v1113_v48, %v1112_v47  ;;  %v1383_v47 = vld [vmem:[%s3449_s7 + $0x18] sm:$0xff] }
  0xf9   : > { %v555_v61 = vadd.f32 %v2962_v53, %v554_v60 }
  0xfb   : > { %2494 = vtanh.f32 %v555_v61  ;;  %v2149_v62 = vpop.f32.mrb[4].mxu0 }
  0xfc   : > { %2496 = vtanh.f32 %v560_v59  ;;  %v570_v63 = vadd.f32 %v2149_v62, %v2962_v53  ;;  %v564_v0 = vpop.f32.mrb[5].mxu0 }
  0xfd   : > { %v565_v1 = vadd.f32 %v2962_v53, %v564_v0 }
  0xff   : > { %2498 = vtanh.f32 %v565_v1  ;;  %v2152_v4 = vpop.f32.mrb[6].mxu0 }
 0x100   : > { %2500 = vtanh.f32 %v570_v63  ;;  %v580_v5 = vadd.f32 %v2152_v4, %v2962_v53  ;;  %v574_v6 = vpop.f32.mrb[7].mxu0 }
 0x101   : > { %v2491_v7 = vpop.eup %2490  ;;  %v575_v8 = vadd.f32 %v2962_v53, %v574_v6 }
 0x102   : > { %v2493_v10 = vpop.eup %2492  ;;  %2197 = vmatprep.mubr.msk.f32.mxu1 %vm746_vm1, %v2491_v7 }
 0x103   : > { %2502 = vtanh.f32 %v575_v8  ;;  %v2155_v13 = vpop.f32.mrb[8].mxu0  ;;  %2198 = vmatmul.mubr.msk.f32.vlgmr.msra.gmra.mrb[0].mxu1 %vm746_vm1, %v2493_v10 }
 0x104   : > { %2504 = vtanh.f32 %v580_v5  ;;  %v590_v14 = vadd.f32 %v2155_v13, %v2962_v53  ;;  %v584_v15 = vpop.f32.mrb[9].mxu0  ;;  %2408 = vmatpush3.bf16.msra.mxu1 %v2405_v52 }
 0x105   : > { %v2495_v16 = vpop.eup %2494  ;;  %v585_v17 = vadd.f32 %v2962_v53, %v584_v15  ;;  %2410 = vmatprep.subr.bf16.mxu1 %v2409_v9 }
 0x106   : > { %v2497_v19 = vpop.eup %2496  ;;  %2200 = vmatprep.mubr.msk.f32.mxu1 %vm746_vm1, %v2495_v16 }
 0x107   : > { %2506 = vtanh.f32 %v585_v17  ;;  %v2158_v22 = vpop.f32.mrb[10].mxu0  ;;  %2201 = vmatmul.mubr.msk.f32.gmra.mrb[2].mxu1 %vm746_vm1, %v2497_v19 }
 0x108   : > { %2508 = vtanh.f32 %v590_v14  ;;  %v600_v23 = vadd.f32 %v2158_v22, %v2962_v53  ;;  %v594_v24 = vpop.f32.mrb[11].mxu0  ;;  %2412 = vmatpush3.bf16.msra.mxu1 %v2409_v9 }
 0x109   : > { %v2499_v25 = vpop.eup %2498  ;;  %v595_v26 = vadd.f32 %v2962_v53, %v594_v24  ;;  %2414 = vmatprep.subr.bf16.mxu1 %v2413_v18 }
 0x10a   : > { %v2501_v28 = vpop.eup %2500  ;;  %2203 = vmatprep.mubr.msk.f32.mxu1 %vm746_vm1, %v2499_v25 }
 0x10b   : > { %2510 = vtanh.f32 %v595_v26  ;;  %v2161_v31 = vpop.f32.mrb[12].mxu0  ;;  %2204 = vmatmul.mubr.msk.f32.gmra.mrb[4].mxu1 %vm746_vm1, %v2501_v28 }
 0x10c   : > { %2512 = vtanh.f32 %v600_v23  ;;  %v610_v32 = vadd.f32 %v2161_v31, %v2962_v53  ;;  %v604_v33 = vpop.f32.mrb[13].mxu0  ;;  %2416 = vmatpush3.bf16.msra.mxu1 %v2413_v18 }
 0x10d   : > { %v2503_v34 = vpop.eup %2502  ;;  %v605_v35 = vadd.f32 %v2962_v53, %v604_v33  ;;  %2418 = vmatprep.subr.bf16.mxu1 %v2417_v27 }
 0x10e   : > { %v2505_v37 = vpop.eup %2504  ;;  %2206 = vmatprep.mubr.msk.f32.mxu1 %vm746_vm1, %v2503_v34 }
 0x10f   : > { %2514 = vtanh.f32 %v605_v35  ;;  %v2164_v40 = vpop.f32.mrb[14].mxu0  ;;  %2207 = vmatmul.mubr.msk.f32.gmra.mrb[6].mxu1 %vm746_vm1, %v2505_v37 }
 0x110   : > { %2516 = vtanh.f32 %v610_v32  ;;  %v620_v41 = vadd.f32 %v2164_v40, %v2962_v53  ;;  %v614_v42 = vpop.f32.mrb[15].mxu0  ;;  %2420 = vmatpush3.bf16.msra.mxu1 %v2417_v27  ;;  %v1114_v40 = vld [vmem:[%s3447_s5 + $0x70] sm:$0xff] }
 0x111   : > { %v2507_v43 = vpop.eup %2506  ;;  %v615_v44 = vadd.f32 %v2962_v53, %v614_v42  ;;  %2422 = vmatprep.subr.bf16.mxu1 %v2421_v36 }
 0x112   : > { %v2509_v46 = vpop.eup %2508  ;;  %2209 = vmatprep.mubr.msk.f32.mxu1 %vm746_vm1, %v2507_v43  ;;  %v1380_v43 = vld [vmem:[%s3449_s7] sm:$0xff] }
 0x113   : > { %2518 = vtanh.f32 %v615_v44  ;;  %v2167_v49 = vpop.f32.mrb[16].mxu0  ;;  %2210 = vmatmul.mubr.msk.f32.gmra.mrb[8].mxu1 %vm746_vm1, %v2509_v46  ;;  %v1381_v44 = vld [vmem:[%s3449_s7 + $0x8] sm:$0xff] }
 0x114   : > { %2520 = vtanh.f32 %v620_v41  ;;  %v630_v50 = vadd.f32 %v2167_v49, %v2962_v53  ;;  %v624_v51 = vpop.f32.mrb[17].mxu0  ;;  %2424 = vmatpush3.bf16.msra.mxu1 %v2421_v36  ;;  %v1115_v41 = vld [vmem:[%s3447_s5 + $0x78] sm:$0xff]  ;;  %v2437_v46 = vpack.c.bf16 %v1381_v44, %v1380_v43  ;;  %v3085_v49 = vld [vmem:[%s3446_s4] ss:$0 sm:$0xff] }
 0x115   : > { %v2511_v52 = vpop.eup %2510  ;;  %v625_v54 = vadd.f32 %v2962_v53, %v624_v51  ;;  %2426 = vmatprep.subr.bf16.mxu1 %v2425_v45  ;;  %v2433_v42 = vpack.c.bf16 %v1115_v41, %v1114_v40 }
 0x116   : > { %v2513_v56 = vpop.eup %2512  ;;  %2212 = vmatprep.mubr.msk.f32.mxu1 %vm746_vm1, %v2511_v52  ;;  %2438 = vmatprep.subr.bf16.mxu0 %v2437_v46 }
 0x117   : > { %2522 = vtanh.f32 %v625_v54  ;;  %v2170_v57 = vpop.f32.mrb[18].mxu0  ;;  %2213 = vmatmul.mubr.msk.f32.gmra.mrb[10].mxu1 %vm746_vm1, %v2513_v56  ;;  %2440 = vmatpush3.bf16.msra.mxu0 %v2437_v46 }
 0x118   : > { %2524 = vtanh.f32 %v630_v50  ;;  %v640_v58 = vadd.f32 %v2170_v57, %v2962_v53  ;;  %v634_v59 = vpop.f32.mrb[19].mxu0  ;;  %2428 = vmatpush3.bf16.msra.mxu1 %v2425_v45  ;;  %v1382_v45 = vld [vmem:[%s3449_s7 + $0x10] sm:$0xff] }
 0x119   : > { %v2515_v60 = vpop.eup %2514  ;;  %v635_v61 = vadd.f32 %v2962_v53, %v634_v59  ;;  %2430 = vmatprep.subr.bf16.mxu1 %v2429_v55  ;;  %v2441_v48 = vpack.c.bf16 %v1383_v47, %v1382_v45 }
 0x11a   : > { %v2517_v62 = vpop.eup %2516  ;;  %2215 = vmatprep.mubr.msk.f32.mxu1 %vm746_vm1, %v2515_v60 }
 0x11b   : > { %2526 = vtanh.f32 %v635_v61  ;;  %v2173_v63 = vpop.f32.mrb[20].mxu0  ;;  %2216 = vmatmul.mubr.msk.f32.gmra.mrb[12].mxu1 %vm746_vm1, %v2517_v62  ;;  %2442 = vmatprep.subr.bf16.mxu0 %v2441_v48 }
 0x11c   : > { %2528 = vtanh.f32 %v640_v58  ;;  %v650_v0 = vadd.f32 %v2173_v63, %v2962_v53  ;;  %v644_v1 = vpop.f32.mrb[21].mxu0  ;;  %2432 = vmatpush3.bf16.msra.mxu1 %v2429_v55  ;;  %2444 = vmatpush3.bf16.msra.mxu0 %v2441_v48 }
 0x11d   : > { %v2519_v2 = vpop.eup %2518  ;;  %v645_v3 = vadd.f32 %v2962_v53, %v644_v1  ;;  %2434 = vmatprep.subr.bf16.mxu1 %v2433_v42 }
 0x11e   : > { %v2521_v4 = vpop.eup %2520  ;;  %2218 = vmatprep.mubr.msk.f32.mxu1 %vm746_vm1, %v2519_v2 }
 0x11f   : > { %2530 = vtanh.f32 %v645_v3  ;;  %v2176_v5 = vpop.f32.mrb[22].mxu0  ;;  %2219 = vmatmul.mubr.msk.f32.gmra.mrb[14].mxu1 %vm746_vm1, %v2521_v4 }
 0x120   : > { %2532 = vtanh.f32 %v650_v0  ;;  %v660_v6 = vadd.f32 %v2176_v5, %v2962_v53  ;;  %v654_v7 = vpop.f32.mrb[23].mxu0  ;;  %2436 = vmatpush3.bf16.msra.mxu1 %v2433_v42 }
 0x121   : > { %v2523_v8 = vpop.eup %2522  ;;  %v655_v9 = vadd.f32 %v2962_v53, %v654_v7  ;;  %2445 = vmatprep.subr.bf16.mxu1 %v2437_v46 }
 0x122   : > { %v2525_v10 = vpop.eup %2524  ;;  %2221 = vmatprep.mubr.msk.f32.mxu1 %vm746_vm1, %v2523_v8 }
 0x123   : > { %2534 = vtanh.f32 %v655_v9  ;;  %v2179_v11 = vpop.f32.mrb[24].mxu0  ;;  %2222 = vmatmul.mubr.msk.f32.gmra.mrb[16].mxu1 %vm746_vm1, %v2525_v10 }
 0x124   : > { %2536 = vtanh.f32 %v660_v6  ;;  %v670_v12 = vadd.f32 %v2179_v11, %v2962_v53  ;;  %v664_v13 = vpop.f32.mrb[25].mxu0 }
 0x125   : > { %v2527_v14 = vpop.eup %2526  ;;  %v665_v15 = vadd.f32 %v2962_v53, %v664_v13 }
 0x126   : > { %v2529_v16 = vpop.eup %2528  ;;  %2224 = vmatprep.mubr.msk.f32.mxu1 %vm746_vm1, %v2527_v14 }
 0x127   : > { %2538 = vtanh.f32 %v665_v15  ;;  %v2182_v17 = vpop.f32.mrb[26].mxu0  ;;  %2225 = vmatmul.mubr.msk.f32.gmra.mrb[18].mxu1 %vm746_vm1, %v2529_v16 }
 0x128   : > { %2540 = vtanh.f32 %v670_v12  ;;  %v680_v18 = vadd.f32 %v2182_v17, %v2962_v53  ;;  %v674_v19 = vpop.f32.mrb[27].mxu0 }
 0x129   : > { %v2531_v20 = vpop.eup %2530  ;;  %v675_v21 = vadd.f32 %v2962_v53, %v674_v19 }
 0x12a   : > { %v2533_v22 = vpop.eup %2532  ;;  %2227 = vmatprep.mubr.msk.f32.mxu1 %vm746_vm1, %v2531_v20 }
 0x12b   : > { %2542 = vtanh.f32 %v675_v21  ;;  %v2185_v23 = vpop.f32.mrb[28].mxu0  ;;  %2228 = vmatmul.mubr.msk.f32.gmra.mrb[20].mxu1 %vm746_vm1, %v2533_v22 }
 0x12c   : > { %2544 = vtanh.f32 %v680_v18  ;;  %v690_v24 = vadd.f32 %v2185_v23, %v2962_v53  ;;  %v684_v25 = vpop.f32.mrb[29].mxu0 }
 0x12d   : > { %v2535_v26 = vpop.eup %2534  ;;  %v685_v27 = vadd.f32 %v2962_v53, %v684_v25 }
 0x12e   : > { %v2537_v28 = vpop.eup %2536  ;;  %2230 = vmatprep.mubr.msk.f32.mxu1 %vm746_vm1, %v2535_v26 }
 0x12f   : > { %2546 = vtanh.f32 %v685_v27  ;;  %v2188_v29 = vpop.f32.mrb[30].mxu0  ;;  %2231 = vmatmul.mubr.msk.f32.gmra.mrb[22].mxu1 %vm746_vm1, %v2537_v28 }
 0x130   : > { %2548 = vtanh.f32 %v690_v24  ;;  %v700_v30 = vadd.f32 %v2188_v29, %v2962_v53  ;;  %v694_v31 = vpop.f32.mrb[31].mxu0 }
 0x131   : > { %v2539_v32 = vpop.eup %2538  ;;  %v695_v33 = vadd.f32 %v2962_v53, %v694_v31 }
 0x132   : > { %v2541_v34 = vpop.eup %2540  ;;  %2233 = vmatprep.mubr.msk.f32.mxu1 %vm746_vm1, %v2539_v32 }
 0x133   : > { %2550 = vtanh.f32 %v695_v33  ;;  %2234 = vmatmul.mubr.msk.f32.gmra.mrb[24].mxu1 %vm746_vm1, %v2541_v34 }
 0x134   : > { %2552 = vtanh.f32 %v700_v30 }
 0x135   : > { %v2543_v35 = vpop.eup %2542 }
 0x136   : > { %v2545_v36 = vpop.eup %2544  ;;  %2236 = vmatprep.mubr.msk.f32.mxu1 %vm746_vm1, %v2543_v35 }
 0x137   : > { %2237 = vmatmul.mubr.msk.f32.gmra.mrb[26].mxu1 %vm746_vm1, %v2545_v36 }
 0x139   : > { %v2547_v37 = vpop.eup %2546 }
 0x13a   : > { %v2549_v38 = vpop.eup %2548  ;;  %2239 = vmatprep.mubr.msk.f32.mxu1 %vm746_vm1, %v2547_v37 }
 0x13b   : > { %2240 = vmatmul.mubr.msk.f32.gmra.mrb[28].mxu1 %vm746_vm1, %v2549_v38 }
 0x13d   : > { %v2551_v53 = vpop.eup %2550 }
 0x13e   : > { %v2553_v39 = vpop.eup %2552  ;;  %2242 = vmatprep.mubr.msk.f32.mxu1 %vm746_vm1, %v2551_v53 }
 0x13f   : > { %2243 = vmatmul.mubr.msk.f32.gmra.mrb[30].mxu1 %vm746_vm1, %v2553_v39 }
 0x1d6   : > { %v2199_v50 = vpop.f32.mrb[0].mxu1 }
 0x1d7   : > { %v915_v51 = vadd.f32 %v2199_v50, %v3085_v49  ;;  %v909_v52 = vpop.f32.mrb[1].mxu1 }
 0x1d8   : > { %v910_v54 = vadd.f32 %v3085_v49, %v909_v52 }
 0x1da   : > { %2554 = vtanh.f32 %v910_v54  ;;  %v2202_v55 = vpop.f32.mrb[2].mxu1 }
 0x1db   : > { %2556 = vtanh.f32 %v915_v51  ;;  %v925_v56 = vadd.f32 %v2202_v55, %v3085_v49  ;;  %v919_v57 = vpop.f32.mrb[3].mxu1 }
 0x1dc   : > { %v920_v58 = vadd.f32 %v3085_v49, %v919_v57 }
 0x1de   : > { %2558 = vtanh.f32 %v920_v58  ;;  %v2205_v59 = vpop.f32.mrb[4].mxu1 }
 0x1df   : > { %2560 = vtanh.f32 %v925_v56  ;;  %v935_v60 = vadd.f32 %v2205_v59, %v3085_v49  ;;  %v929_v61 = vpop.f32.mrb[5].mxu1 }
 0x1e0   : > { %v930_v62 = vadd.f32 %v3085_v49, %v929_v61 }
 0x1e2   : > { %2562 = vtanh.f32 %v930_v62  ;;  %v2208_v63 = vpop.f32.mrb[6].mxu1 }
 0x1e3   : > { %2564 = vtanh.f32 %v935_v60  ;;  %v945_v0 = vadd.f32 %v2208_v63, %v3085_v49  ;;  %v939_v1 = vpop.f32.mrb[7].mxu1 }
 0x1e4   : > { %v3094_v2 = vpop.eup %2554  ;;  %v940_v3 = vadd.f32 %v3085_v49, %v939_v1 }
 0x1e5   : > { %v3097_v4 = vpop.eup %2556  ;;  %2277 = vmatprep.mubr.f32.mxu1 %v3094_v2 }
 0x1e6   : > { %2566 = vtanh.f32 %v940_v3  ;;  %v2211_v5 = vpop.f32.mrb[8].mxu1  ;;  %2278 = vmatmul.mubr.f32.vlgmr.msra.gmra.mrb[32].mxu1 %v3097_v4 }
 0x1e7   : > { %2568 = vtanh.f32 %v945_v0  ;;  %v955_v6 = vadd.f32 %v2211_v5, %v3085_v49  ;;  %v949_v7 = vpop.f32.mrb[9].mxu1  ;;  %2447 = vmatpush3.bf16.msra.mxu1 %v2437_v46 }
 0x1e8   : > { %v3102_v8 = vpop.eup %2558  ;;  %v950_v9 = vadd.f32 %v3085_v49, %v949_v7  ;;  %2446 = vmatprep.subr.bf16.mxu1 %v2441_v48 }
 0x1e9   : > { %v3105_v10 = vpop.eup %2560  ;;  %2280 = vmatprep.mubr.f32.mxu1 %v3102_v8 }
 0x1ea   : > { %2570 = vtanh.f32 %v950_v9  ;;  %v2214_v11 = vpop.f32.mrb[10].mxu1  ;;  %2281 = vmatmul.mubr.f32.gmra.mrb[34].mxu1 %v3105_v10 }
 0x1eb   : > { %2572 = vtanh.f32 %v955_v6  ;;  %v965_v12 = vadd.f32 %v2214_v11, %v3085_v49  ;;  %v959_v13 = vpop.f32.mrb[11].mxu1  ;;  %2448 = vmatpush3.bf16.msra.mxu1 %v2441_v48 }
 0x1ec   : > { %v3110_v14 = vpop.eup %2562  ;;  %v960_v15 = vadd.f32 %v3085_v49, %v959_v13 }
 0x1ed   : > { %v3113_v16 = vpop.eup %2564  ;;  %2283 = vmatprep.mubr.f32.mxu1 %v3110_v14 }
 0x1ee   : > { %2574 = vtanh.f32 %v960_v15  ;;  %v2217_v17 = vpop.f32.mrb[12].mxu1  ;;  %2284 = vmatmul.mubr.f32.gmra.mrb[36].mxu1 %v3113_v16 }
 0x1ef   : > { %2576 = vtanh.f32 %v965_v12  ;;  %v975_v18 = vadd.f32 %v2217_v17, %v3085_v49  ;;  %v969_v19 = vpop.f32.mrb[13].mxu1 }
 0x1f0   : > { %v3118_v20 = vpop.eup %2566  ;;  %v970_v21 = vadd.f32 %v3085_v49, %v969_v19 }
 0x1f1   : > { %v3121_v22 = vpop.eup %2568  ;;  %2286 = vmatprep.mubr.f32.mxu1 %v3118_v20 }
 0x1f2   : > { %2578 = vtanh.f32 %v970_v21  ;;  %v2220_v23 = vpop.f32.mrb[14].mxu1  ;;  %2287 = vmatmul.mubr.f32.gmra.mrb[38].mxu1 %v3121_v22 }
 0x1f3   : > { %2580 = vtanh.f32 %v975_v18  ;;  %v985_v24 = vadd.f32 %v2220_v23, %v3085_v49  ;;  %v979_v25 = vpop.f32.mrb[15].mxu1 }
 0x1f4   : > { %v3126_v26 = vpop.eup %2570  ;;  %v980_v27 = vadd.f32 %v3085_v49, %v979_v25 }
 0x1f5   : > { %v3129_v28 = vpop.eup %2572  ;;  %2289 = vmatprep.mubr.f32.mxu1 %v3126_v26 }
 0x1f6   : > { %2582 = vtanh.f32 %v980_v27  ;;  %v2223_v29 = vpop.f32.mrb[16].mxu1  ;;  %2290 = vmatmul.mubr.f32.gmra.mrb[40].mxu1 %v3129_v28 }
 0x1f7   : > { %2584 = vtanh.f32 %v985_v24  ;;  %v995_v30 = vadd.f32 %v2223_v29, %v3085_v49  ;;  %v989_v31 = vpop.f32.mrb[17].mxu1  ;;  %v3218_v29 = vld [vmem:[%s3448_s6] ss:$0 sm:$0xff] }
 0x1f8   : > { %v3134_v32 = vpop.eup %2574  ;;  %v990_v33 = vadd.f32 %v3085_v49, %v989_v31 }
 0x1f9   : > { %v3137_v34 = vpop.eup %2576  ;;  %2292 = vmatprep.mubr.f32.mxu1 %v3134_v32 }
 0x1fa   : > { %2586 = vtanh.f32 %v990_v33  ;;  %v2226_v35 = vpop.f32.mrb[18].mxu1  ;;  %2293 = vmatmul.mubr.f32.gmra.mrb[42].mxu1 %v3137_v34 }
 0x1fb   : > { %2588 = vtanh.f32 %v995_v30  ;;  %v1005_v36 = vadd.f32 %v2226_v35, %v3085_v49  ;;  %v999_v37 = vpop.f32.mrb[19].mxu1 }
 0x1fc   : > { %v3142_v38 = vpop.eup %2578  ;;  %v1000_v53 = vadd.f32 %v3085_v49, %v999_v37 }
 0x1fd   : > { %v3145_v39 = vpop.eup %2580  ;;  %2295 = vmatprep.mubr.f32.mxu1 %v3142_v38 }
 0x1fe   : > { %2590 = vtanh.f32 %v1000_v53  ;;  %v2229_v40 = vpop.f32.mrb[20].mxu1  ;;  %2296 = vmatmul.mubr.f32.gmra.mrb[44].mxu1 %v3145_v39 }
 0x1ff   : > { %2592 = vtanh.f32 %v1005_v36  ;;  %v1015_v41 = vadd.f32 %v2229_v40, %v3085_v49  ;;  %v1009_v42 = vpop.f32.mrb[21].mxu1 }
 0x200   : > { %v3150_v43 = vpop.eup %2582  ;;  %v1010_v44 = vadd.f32 %v3085_v49, %v1009_v42 }
 0x201   : > { %v3153_v45 = vpop.eup %2584  ;;  %2298 = vmatprep.mubr.f32.mxu1 %v3150_v43 }
 0x202   : > { %2594 = vtanh.f32 %v1010_v44  ;;  %v2232_v46 = vpop.f32.mrb[22].mxu1  ;;  %2299 = vmatmul.mubr.f32.gmra.mrb[46].mxu1 %v3153_v45 }
 0x203   : > { %2596 = vtanh.f32 %v1015_v41  ;;  %v1025_v47 = vadd.f32 %v2232_v46, %v3085_v49  ;;  %v1019_v48 = vpop.f32.mrb[23].mxu1 }
 0x204   : > { %v3158_v50 = vpop.eup %2586  ;;  %v1020_v51 = vadd.f32 %v3085_v49, %v1019_v48 }
 0x205   : > { %v3161_v52 = vpop.eup %2588  ;;  %2301 = vmatprep.mubr.f32.mxu1 %v3158_v50 }
 0x206   : > { %2598 = vtanh.f32 %v1020_v51  ;;  %v2235_v54 = vpop.f32.mrb[24].mxu1  ;;  %2302 = vmatmul.mubr.f32.gmra.mrb[48].mxu1 %v3161_v52 }
 0x207   : > { %2600 = vtanh.f32 %v1025_v47  ;;  %v1035_v55 = vadd.f32 %v2235_v54, %v3085_v49  ;;  %v1029_v56 = vpop.f32.mrb[25].mxu1 }
 0x208   : > { %v3166_v57 = vpop.eup %2590  ;;  %v1030_v58 = vadd.f32 %v3085_v49, %v1029_v56 }
 0x209   : > { %v3169_v59 = vpop.eup %2592  ;;  %2304 = vmatprep.mubr.f32.mxu1 %v3166_v57 }
 0x20a   : > { %2602 = vtanh.f32 %v1030_v58  ;;  %v2238_v60 = vpop.f32.mrb[26].mxu1  ;;  %2305 = vmatmul.mubr.f32.gmra.mrb[50].mxu1 %v3169_v59 }
 0x20b   : > { %2604 = vtanh.f32 %v1035_v55  ;;  %v1045_v61 = vadd.f32 %v2238_v60, %v3085_v49  ;;  %v1039_v62 = vpop.f32.mrb[27].mxu1 }
 0x20c   : > { %v3174_v63 = vpop.eup %2594  ;;  %v1040_v0 = vadd.f32 %v3085_v49, %v1039_v62 }
 0x20d   : > { %v3177_v1 = vpop.eup %2596  ;;  %2307 = vmatprep.mubr.f32.mxu1 %v3174_v63 }
 0x20e   : > { %2606 = vtanh.f32 %v1040_v0  ;;  %v2241_v3 = vpop.f32.mrb[28].mxu1  ;;  %2308 = vmatmul.mubr.f32.gmra.mrb[52].mxu1 %v3177_v1 }
 0x20f   : > { %2608 = vtanh.f32 %v1045_v61  ;;  %v1055_v5 = vadd.f32 %v2241_v3, %v3085_v49  ;;  %v1049_v6 = vpop.f32.mrb[29].mxu1 }
 0x210   : > { %v3182_v7 = vpop.eup %2598  ;;  %v1050_v9 = vadd.f32 %v3085_v49, %v1049_v6 }
 0x211   : > { %v3185_v11 = vpop.eup %2600  ;;  %2310 = vmatprep.mubr.f32.mxu1 %v3182_v7 }
 0x212   : > { %2610 = vtanh.f32 %v1050_v9  ;;  %v2244_v12 = vpop.f32.mrb[30].mxu1  ;;  %2311 = vmatmul.mubr.f32.gmra.mrb[54].mxu1 %v3185_v11 }
 0x213   : > { %2612 = vtanh.f32 %v1055_v5  ;;  %v1065_v13 = vadd.f32 %v2244_v12, %v3085_v49  ;;  %v1059_v15 = vpop.f32.mrb[31].mxu1 }
 0x214   : > { %v3190_v17 = vpop.eup %2602  ;;  %v1060_v18 = vadd.f32 %v3085_v49, %v1059_v15 }
 0x215   : > { %v3193_v19 = vpop.eup %2604  ;;  %2313 = vmatprep.mubr.f32.mxu1 %v3190_v17 }
 0x216   : > { %2614 = vtanh.f32 %v1060_v18  ;;  %2314 = vmatmul.mubr.f32.gmra.mrb[56].mxu1 %v3193_v19 }
 0x217   : > { %2616 = vtanh.f32 %v1065_v13 }
 0x218   : > { %v3197_v21 = vpop.eup %2606 }
 0x219   : > { %v3199_v23 = vpop.eup %2608  ;;  %2316 = vmatprep.mubr.f32.mxu1 %v3197_v21 }
 0x21a   : > { %2317 = vmatmul.mubr.f32.gmra.mrb[58].mxu1 %v3199_v23 }
 0x21c   : > { %v3203_v24 = vpop.eup %2610 }
 0x21d   : > { %v3205_v25 = vpop.eup %2612  ;;  %2319 = vmatprep.mubr.f32.mxu1 %v3203_v24 }
 0x21e   : > { %2320 = vmatmul.mubr.f32.gmra.mrb[60].mxu1 %v3205_v25 }
 0x220   : > { %v3209_v49 = vpop.eup %2614 }
 0x221   : > { %v3211_v27 = vpop.eup %2616  ;;  %2322 = vmatprep.mubr.f32.mxu1 %v3209_v49 }
 0x222   : > { %2323 = vmatmul.mubr.f32.gmra.mrb[62].mxu1 %v3211_v27 }
 0x2b9   : > { %v2279_v30 = vpop.f32.mrb[32].mxu1 }
 0x2ba   : > { %v1195_v31 = vadd.f32 %v2279_v30, %v3218_v29  ;;  %v1189_v33 = vpop.f32.mrb[33].mxu1 }
 0x2bb   : > { %v1190_v35 = vadd.f32 %v3218_v29, %v1189_v33 }
 0x2bd   : > { %2618 = vtanh.f32 %v1190_v35  ;;  %v2282_v36 = vpop.f32.mrb[34].mxu1 }
 0x2be   : > { %2620 = vtanh.f32 %v1195_v31  ;;  %v1205_v37 = vadd.f32 %v2282_v36, %v3218_v29  ;;  %v1199_v53 = vpop.f32.mrb[35].mxu1 }
 0x2bf   : > { %v1200_v40 = vadd.f32 %v3218_v29, %v1199_v53 }
 0x2c1   : > { %2622 = vtanh.f32 %v1200_v40  ;;  %v2285_v41 = vpop.f32.mrb[36].mxu1 }
 0x2c2   : > { %2624 = vtanh.f32 %v1205_v37  ;;  %v1215_v42 = vadd.f32 %v2285_v41, %v3218_v29  ;;  %v1209_v44 = vpop.f32.mrb[37].mxu1 }
 0x2c3   : > { %v1210_v46 = vadd.f32 %v3218_v29, %v1209_v44 }
 0x2c5   : > { %2626 = vtanh.f32 %v1210_v46  ;;  %v2288_v47 = vpop.f32.mrb[38].mxu1 }
 0x2c6   : > { %2628 = vtanh.f32 %v1215_v42  ;;  %v1225_v48 = vadd.f32 %v2288_v47, %v3218_v29  ;;  %v1219_v51 = vpop.f32.mrb[39].mxu1 }
 0x2c7   : > { %v2619_v54 = vpop.eup %2618  ;;  %v1220_v55 = vadd.f32 %v3218_v29, %v1219_v51 }
 0x2c8   : > { %v2621_v56 = vpop.eup %2620  ;;  %2333 = vmatprep.mubr.msk.f32.mxu0 %vm746_vm1, %v2619_v54 }
 0x2c9   : > { %2630 = vtanh.f32 %v1220_v55  ;;  %v2291_v58 = vpop.f32.mrb[40].mxu1  ;;  %2334 = vmatmul.mubr.msk.f32.vlgmr.msra.gmra.mrb[32].mxu0 %vm746_vm1, %v2621_v56 }
 0x2ca   : > { %2632 = vtanh.f32 %v1225_v48  ;;  %v1235_v60 = vadd.f32 %v2291_v58, %v3218_v29  ;;  %v1229_v61 = vpop.f32.mrb[41].mxu1 }
 0x2cb   : > { %v2623_v62 = vpop.eup %2622  ;;  %v1230_v0 = vadd.f32 %v3218_v29, %v1229_v61 }
 0x2cc   : > { %v2625_v3 = vpop.eup %2624  ;;  %2336 = vmatprep.mubr.msk.f32.mxu0 %vm746_vm1, %v2623_v62 }
 0x2cd   : > { %2634 = vtanh.f32 %v1230_v0  ;;  %v2294_v5 = vpop.f32.mrb[42].mxu1  ;;  %2337 = vmatmul.mubr.msk.f32.gmra.mrb[34].mxu0 %vm746_vm1, %v2625_v3 }
 0x2ce   : > { %2636 = vtanh.f32 %v1235_v60  ;;  %v1245_v6 = vadd.f32 %v2294_v5, %v3218_v29  ;;  %v1239_v9 = vpop.f32.mrb[43].mxu1 }
 0x2cf   : > { %v2627_v12 = vpop.eup %2626  ;;  %v1240_v13 = vadd.f32 %v3218_v29, %v1239_v9 }
 0x2d0   : > { %v2629_v15 = vpop.eup %2628  ;;  %2339 = vmatprep.mubr.msk.f32.mxu0 %vm746_vm1, %v2627_v12 }
 0x2d1   : > { %2638 = vtanh.f32 %v1240_v13  ;;  %v2297_v18 = vpop.f32.mrb[44].mxu1  ;;  %2340 = vmatmul.mubr.msk.f32.gmra.mrb[36].mxu0 %vm746_vm1, %v2629_v15 }
 0x2d2   : > { %2640 = vtanh.f32 %v1245_v6  ;;  %v1255_v30 = vadd.f32 %v2297_v18, %v3218_v29  ;;  %v1249_v31 = vpop.f32.mrb[45].mxu1 }
 0x2d3   : > { %v2631_v33 = vpop.eup %2630  ;;  %v1250_v35 = vadd.f32 %v3218_v29, %v1249_v31 }
 0x2d4   : > { %v2633_v36 = vpop.eup %2632  ;;  %2342 = vmatprep.mubr.msk.f32.mxu0 %vm746_vm1, %v2631_v33 }
 0x2d5   : > { %2642 = vtanh.f32 %v1250_v35  ;;  %v2300_v37 = vpop.f32.mrb[46].mxu1  ;;  %2343 = vmatmul.mubr.msk.f32.gmra.mrb[38].mxu0 %vm746_vm1, %v2633_v36 }
 0x2d6   : > { %2644 = vtanh.f32 %v1255_v30  ;;  %v1265_v53 = vadd.f32 %v2300_v37, %v3218_v29  ;;  %v1259_v40 = vpop.f32.mrb[47].mxu1 }
 0x2d7   : > { %v2635_v41 = vpop.eup %2634  ;;  %v1260_v42 = vadd.f32 %v3218_v29, %v1259_v40 }
 0x2d8   : > { %v2637_v44 = vpop.eup %2636  ;;  %2345 = vmatprep.mubr.msk.f32.mxu0 %vm746_vm1, %v2635_v41 }
 0x2d9   : > { %2646 = vtanh.f32 %v1260_v42  ;;  %v2303_v46 = vpop.f32.mrb[48].mxu1  ;;  %2346 = vmatmul.mubr.msk.f32.gmra.mrb[40].mxu0 %vm746_vm1, %v2637_v44 }
 0x2da   : > { %2648 = vtanh.f32 %v1265_v53  ;;  %v1275_v47 = vadd.f32 %v2303_v46, %v3218_v29  ;;  %v1269_v48 = vpop.f32.mrb[49].mxu1 }
 0x2db   : > { %v2639_v51 = vpop.eup %2638  ;;  %v1270_v54 = vadd.f32 %v3218_v29, %v1269_v48 }
 0x2dc   : > { %v2641_v55 = vpop.eup %2640  ;;  %2348 = vmatprep.mubr.msk.f32.mxu0 %vm746_vm1, %v2639_v51 }
 0x2dd   : > { %2650 = vtanh.f32 %v1270_v54  ;;  %v2306_v56 = vpop.f32.mrb[50].mxu1  ;;  %2349 = vmatmul.mubr.msk.f32.gmra.mrb[42].mxu0 %vm746_vm1, %v2641_v55 }
 0x2de   : > { %2652 = vtanh.f32 %v1275_v47  ;;  %v1285_v58 = vadd.f32 %v2306_v56, %v3218_v29  ;;  %v1279_v60 = vpop.f32.mrb[51].mxu1 }
 0x2df   : > { %v2643_v61 = vpop.eup %2642  ;;  %v1280_v62 = vadd.f32 %v3218_v29, %v1279_v60 }
 0x2e0   : > { %v2645_v0 = vpop.eup %2644  ;;  %2351 = vmatprep.mubr.msk.f32.mxu0 %vm746_vm1, %v2643_v61 }
 0x2e1   : > { %2654 = vtanh.f32 %v1280_v62  ;;  %v2309_v3 = vpop.f32.mrb[52].mxu1  ;;  %2352 = vmatmul.mubr.msk.f32.gmra.mrb[44].mxu0 %vm746_vm1, %v2645_v0 }
 0x2e2   : > { %2656 = vtanh.f32 %v1285_v58  ;;  %v1295_v5 = vadd.f32 %v2309_v3, %v3218_v29  ;;  %v1289_v6 = vpop.f32.mrb[53].mxu1 }
 0x2e3   : > { %v2647_v9 = vpop.eup %2646  ;;  %v1290_v12 = vadd.f32 %v3218_v29, %v1289_v6 }
 0x2e4   : > { %v2649_v13 = vpop.eup %2648  ;;  %2354 = vmatprep.mubr.msk.f32.mxu0 %vm746_vm1, %v2647_v9 }
 0x2e5   : > { %2658 = vtanh.f32 %v1290_v12  ;;  %v2312_v15 = vpop.f32.mrb[54].mxu1  ;;  %2355 = vmatmul.mubr.msk.f32.gmra.mrb[46].mxu0 %vm746_vm1, %v2649_v13 }
 0x2e6   : > { %2660 = vtanh.f32 %v1295_v5  ;;  %v1305_v18 = vadd.f32 %v2312_v15, %v3218_v29  ;;  %v1299_v30 = vpop.f32.mrb[55].mxu1 }
 0x2e7   : > { %v2651_v31 = vpop.eup %2650  ;;  %v1300_v33 = vadd.f32 %v3218_v29, %v1299_v30 }
 0x2e8   : > { %v2653_v35 = vpop.eup %2652  ;;  %2357 = vmatprep.mubr.msk.f32.mxu0 %vm746_vm1, %v2651_v31 }
 0x2e9   : > { %2662 = vtanh.f32 %v1300_v33  ;;  %v2315_v36 = vpop.f32.mrb[56].mxu1  ;;  %2358 = vmatmul.mubr.msk.f32.gmra.mrb[48].mxu0 %vm746_vm1, %v2653_v35  ;;  %v3288_v33 = vld [vmem:[%s3450_s8] ss:$0 sm:$0xff] }
 0x2ea   : > { %2664 = vtanh.f32 %v1305_v18  ;;  %v1315_v37 = vadd.f32 %v2315_v36, %v3218_v29  ;;  %v1309_v53 = vpop.f32.mrb[57].mxu1 }
 0x2eb   : > { %v2655_v40 = vpop.eup %2654  ;;  %v1310_v41 = vadd.f32 %v3218_v29, %v1309_v53 }
 0x2ec   : > { %v2657_v42 = vpop.eup %2656  ;;  %2360 = vmatprep.mubr.msk.f32.mxu0 %vm746_vm1, %v2655_v40 }
 0x2ed   : > { %2666 = vtanh.f32 %v1310_v41  ;;  %v2318_v44 = vpop.f32.mrb[58].mxu1  ;;  %2361 = vmatmul.mubr.msk.f32.gmra.mrb[50].mxu0 %vm746_vm1, %v2657_v42 }
 0x2ee   : > { %2668 = vtanh.f32 %v1315_v37  ;;  %v1325_v46 = vadd.f32 %v2318_v44, %v3218_v29  ;;  %v1319_v47 = vpop.f32.mrb[59].mxu1 }
 0x2ef   : > { %v2659_v48 = vpop.eup %2658  ;;  %v1320_v51 = vadd.f32 %v3218_v29, %v1319_v47 }
 0x2f0   : > { %v2661_v54 = vpop.eup %2660  ;;  %2363 = vmatprep.mubr.msk.f32.mxu0 %vm746_vm1, %v2659_v48 }
 0x2f1   : > { %2670 = vtanh.f32 %v1320_v51  ;;  %v2321_v55 = vpop.f32.mrb[60].mxu1  ;;  %2364 = vmatmul.mubr.msk.f32.gmra.mrb[52].mxu0 %vm746_vm1, %v2661_v54 }
 0x2f2   : > { %2672 = vtanh.f32 %v1325_v46  ;;  %v1335_v56 = vadd.f32 %v2321_v55, %v3218_v29  ;;  %v1329_v58 = vpop.f32.mrb[61].mxu1 }
 0x2f3   : > { %v2663_v60 = vpop.eup %2662  ;;  %v1330_v61 = vadd.f32 %v3218_v29, %v1329_v58 }
 0x2f4   : > { %v2665_v62 = vpop.eup %2664  ;;  %2366 = vmatprep.mubr.msk.f32.mxu0 %vm746_vm1, %v2663_v60 }
 0x2f5   : > { %2674 = vtanh.f32 %v1330_v61  ;;  %v2324_v0 = vpop.f32.mrb[62].mxu1  ;;  %2367 = vmatmul.mubr.msk.f32.gmra.mrb[54].mxu0 %vm746_vm1, %v2665_v62 }
 0x2f6   : > { %2676 = vtanh.f32 %v1335_v56  ;;  %v1345_v3 = vadd.f32 %v2324_v0, %v3218_v29  ;;  %v1339_v5 = vpop.f32.mrb[63].mxu1 }
 0x2f7   : > { %v2667_v6 = vpop.eup %2666  ;;  %v1340_v9 = vadd.f32 %v3218_v29, %v1339_v5 }
 0x2f8   : > { %v2669_v12 = vpop.eup %2668  ;;  %2369 = vmatprep.mubr.msk.f32.mxu0 %vm746_vm1, %v2667_v6 }
 0x2f9   : > { %2678 = vtanh.f32 %v1340_v9  ;;  %2370 = vmatmul.mubr.msk.f32.gmra.mrb[56].mxu0 %vm746_vm1, %v2669_v12 }
 0x2fa   : > { %2680 = vtanh.f32 %v1345_v3 }
 0x2fb   : > { %v2671_v13 = vpop.eup %2670 }
 0x2fc   : > { %v2673_v15 = vpop.eup %2672  ;;  %2372 = vmatprep.mubr.msk.f32.mxu0 %vm746_vm1, %v2671_v13 }
 0x2fd   : > { %2373 = vmatmul.mubr.msk.f32.gmra.mrb[58].mxu0 %vm746_vm1, %v2673_v15 }
 0x2ff   : > { %v2675_v18 = vpop.eup %2674 }
 0x300   : > { %v2677_v30 = vpop.eup %2676  ;;  %2375 = vmatprep.mubr.msk.f32.mxu0 %vm746_vm1, %v2675_v18 }
 0x301   : > { %2376 = vmatmul.mubr.msk.f32.gmra.mrb[60].mxu0 %vm746_vm1, %v2677_v30 }
 0x303   : > { %v2679_v29 = vpop.eup %2678 }
 0x304   : > { %v2681_v31 = vpop.eup %2680  ;;  %2378 = vmatprep.mubr.msk.f32.mxu1 %vm746_vm1, %v2679_v29 }
 0x305   : > { %2379 = vmatmul.mubr.msk.f32.vlgmr.msra.gmra.mrb[64].mxu1 %vm746_vm1, %v2681_v31 }
 0x39c   : > { %v2335_v35 = vpop.f32.mrb[32].mxu0 }
 0x39d   : > { %v1559_v36 = vadd.f32 %v2335_v35, %v3288_v33  ;;  %v1553_v37 = vpop.f32.mrb[33].mxu0 }
 0x39e   : > { %v1554_v53 = vadd.f32 %v3288_v33, %v1553_v37 }
 0x39f   : > { %v1713_v40 = vadd.f32 %v3097_v4, %v1559_v36 }
 0x3a0   : > { %v1712_v41 = vadd.f32 %v3094_v2, %v1554_v53  ;;  %v2338_v42 = vpop.f32.mrb[34].mxu0 }
 0x3a1   : > { %1745 = vst [vmem:[%s3296_s29 + $0x8] sm:$0xff] %v1713_v40  ;;  %v1569_v44 = vadd.f32 %v2338_v42, %v3288_v33  ;;  %v1563_v46 = vpop.f32.mrb[35].mxu0 }
 0x3a2   : > { %1744 = vst [vmem:[%s3296_s29] sm:$0xff] %v1712_v41  ;;  %v1564_v47 = vadd.f32 %v3288_v33, %v1563_v46 }
 0x3a3   : > { %v1715_v4 = vadd.f32 %v3105_v10, %v1569_v44 }
 0x3a4   : > { %v1714_v2 = vadd.f32 %v3102_v8, %v1564_v47  ;;  %v2341_v48 = vpop.f32.mrb[36].mxu0 }
 0x3a5   : > { %1747 = vst [vmem:[%s3296_s29 + $0x18] sm:$0xff] %v1715_v4  ;;  %v1579_v51 = vadd.f32 %v2341_v48, %v3288_v33  ;;  %v1573_v54 = vpop.f32.mrb[37].mxu0 }
 0x3a6   : > { %1746 = vst [vmem:[%s3296_s29 + $0x10] sm:$0xff] %v1714_v2  ;;  %v1574_v55 = vadd.f32 %v3288_v33, %v1573_v54 }
 0x3a7   : > { %v1717_v56 = vadd.f32 %v3113_v16, %v1579_v51 }
 0x3a8   : > { %v1716_v58 = vadd.f32 %v3110_v14, %v1574_v55  ;;  %v2344_v60 = vpop.f32.mrb[38].mxu0 }
 0x3a9   : > { %1749 = vst [vmem:[%s3296_s29 + $0x28] sm:$0xff] %v1717_v56  ;;  %v1589_v10 = vadd.f32 %v2344_v60, %v3288_v33  ;;  %v1583_v8 = vpop.f32.mrb[39].mxu0 }
 0x3aa   : > { %1748 = vst [vmem:[%s3296_s29 + $0x20] sm:$0xff] %v1716_v58  ;;  %v1584_v61 = vadd.f32 %v3288_v33, %v1583_v8 }
 0x3ab   : > { %v1719_v62 = vadd.f32 %v3121_v22, %v1589_v10 }
 0x3ac   : > { %v1718_v0 = vadd.f32 %v3118_v20, %v1584_v61  ;;  %v2347_v3 = vpop.f32.mrb[40].mxu0 }
 0x3ad   : > { %1751 = vst [vmem:[%s3296_s29 + $0x38] sm:$0xff] %v1719_v62  ;;  %v1599_v16 = vadd.f32 %v2347_v3, %v3288_v33  ;;  %v1593_v14 = vpop.f32.mrb[41].mxu0 }
 0x3ae   : > { %1750 = vst [vmem:[%s3296_s29 + $0x30] sm:$0xff] %v1718_v0  ;;  %v1594_v5 = vadd.f32 %v3288_v33, %v1593_v14 }
 0x3af   : > { %v1721_v6 = vadd.f32 %v3129_v28, %v1599_v16 }
 0x3b0   : > { %v1720_v9 = vadd.f32 %v3126_v26, %v1594_v5  ;;  %v2350_v12 = vpop.f32.mrb[42].mxu0 }
 0x3b1   : > { %1753 = vst [vmem:[%s3296_s29 + $0x48] sm:$0xff] %v1721_v6  ;;  %v1609_v22 = vadd.f32 %v2350_v12, %v3288_v33  ;;  %v1603_v20 = vpop.f32.mrb[43].mxu0 }
 0x3b2   : > { %1752 = vst [vmem:[%s3296_s29 + $0x40] sm:$0xff] %v1720_v9  ;;  %v1604_v13 = vadd.f32 %v3288_v33, %v1603_v20 }
 0x3b3   : > { %v1723_v15 = vadd.f32 %v3137_v34, %v1609_v22 }
 0x3b4   : > { %v1722_v18 = vadd.f32 %v3134_v32, %v1604_v13  ;;  %v2353_v30 = vpop.f32.mrb[44].mxu0 }
 0x3b5   : > { %1755 = vst [vmem:[%s3296_s29 + $0x58] sm:$0xff] %v1723_v15  ;;  %v1619_v28 = vadd.f32 %v2353_v30, %v3288_v33  ;;  %v1613_v26 = vpop.f32.mrb[45].mxu0 }
 0x3b6   : > { %1754 = vst [vmem:[%s3296_s29 + $0x50] sm:$0xff] %v1722_v18  ;;  %v1614_v29 = vadd.f32 %v3288_v33, %v1613_v26 }
 0x3b7   : > { %v1725_v31 = vadd.f32 %v3145_v39, %v1619_v28 }
 0x3b8   : > { %v1724_v35 = vadd.f32 %v3142_v38, %v1614_v29  ;;  %v2356_v36 = vpop.f32.mrb[46].mxu0 }
 0x3b9   : > { %1757 = vst [vmem:[%s3296_s29 + $0x68] sm:$0xff] %v1725_v31  ;;  %v1629_v34 = vadd.f32 %v2356_v36, %v3288_v33  ;;  %v1623_v32 = vpop.f32.mrb[47].mxu0 }
 0x3ba   : > { %1756 = vst [vmem:[%s3296_s29 + $0x60] sm:$0xff] %v1724_v35  ;;  %v1624_v37 = vadd.f32 %v3288_v33, %v1623_v32 }
 0x3bb   : > { %v1727_v53 = vadd.f32 %v3153_v45, %v1629_v34 }
 0x3bc   : > { %v1726_v40 = vadd.f32 %v3150_v43, %v1624_v37  ;;  %v2359_v41 = vpop.f32.mrb[48].mxu0 }
 0x3bd   : > { %1759 = vst [vmem:[%s3296_s29 + $0x78] sm:$0xff] %v1727_v53  ;;  %v1639_v39 = vadd.f32 %v2359_v41, %v3288_v33  ;;  %v1633_v38 = vpop.f32.mrb[49].mxu0 }
 0x3be   : > { %1758 = vst [vmem:[%s3296_s29 + $0x70] sm:$0xff] %v1726_v40  ;;  %v1634_v42 = vadd.f32 %v3288_v33, %v1633_v38 }
 0x3bf   : > { %v1729_v44 = vadd.f32 %v3161_v52, %v1639_v39 }
 0x3c0   : > { %v1728_v46 = vadd.f32 %v3158_v50, %v1634_v42  ;;  %v2362_v47 = vpop.f32.mrb[50].mxu0 }
 0x3c1   : > { %1761 = vst [vmem:[%s3296_s29 + $0x88] sm:$0xff] %v1729_v44  ;;  %v1649_v45 = vadd.f32 %v2362_v47, %v3288_v33  ;;  %v1643_v43 = vpop.f32.mrb[51].mxu0 }
 0x3c2   : > { %1760 = vst [vmem:[%s3296_s29 + $0x80] sm:$0xff] %v1728_v46  ;;  %v1644_v4 = vadd.f32 %v3288_v33, %v1643_v43 }
 0x3c3   : > { %v1731_v2 = vadd.f32 %v3169_v59, %v1649_v45 }
 0x3c4   : > { %v1730_v48 = vadd.f32 %v3166_v57, %v1644_v4  ;;  %v2365_v51 = vpop.f32.mrb[52].mxu0 }
 0x3c5   : > { %1763 = vst [vmem:[%s3296_s29 + $0x98] sm:$0xff] %v1731_v2  ;;  %v1659_v52 = vadd.f32 %v2365_v51, %v3288_v33  ;;  %v1653_v50 = vpop.f32.mrb[53].mxu0 }
 0x3c6   : > { %1762 = vst [vmem:[%s3296_s29 + $0x90] sm:$0xff] %v1730_v48  ;;  %v1654_v54 = vadd.f32 %v3288_v33, %v1653_v50 }
 0x3c7   : > { %v1733_v55 = vadd.f32 %v3177_v1, %v1659_v52 }
 0x3c8   : > { %v1732_v56 = vadd.f32 %v3174_v63, %v1654_v54  ;;  %v2368_v58 = vpop.f32.mrb[54].mxu0 }
 0x3c9   : > { %1765 = vst [vmem:[%s3296_s29 + $0xa8] sm:$0xff] %v1733_v55  ;;  %v1669_v59 = vadd.f32 %v2368_v58, %v3288_v33  ;;  %v1663_v57 = vpop.f32.mrb[55].mxu0 }
 0x3ca   : > { %1764 = vst [vmem:[%s3296_s29 + $0xa0] sm:$0xff] %v1732_v56  ;;  %v1664_v60 = vadd.f32 %v3288_v33, %v1663_v57 }
 0x3cb   : > { %v1735_v10 = vadd.f32 %v3185_v11, %v1669_v59 }
 0x3cc   : > { %v1734_v8 = vadd.f32 %v3182_v7, %v1664_v60  ;;  %v2371_v61 = vpop.f32.mrb[56].mxu0 }
 0x3cd   : > { %1767 = vst [vmem:[%s3296_s29 + $0xb8] sm:$0xff] %v1735_v10  ;;  %v1679_v1 = vadd.f32 %v2371_v61, %v3288_v33  ;;  %v1673_v63 = vpop.f32.mrb[57].mxu0 }
 0x3ce   : > { %1766 = vst [vmem:[%s3296_s29 + $0xb0] sm:$0xff] %v1734_v8  ;;  %v1674_v62 = vadd.f32 %v3288_v33, %v1673_v63 }
 0x3cf   : > { %v1737_v0 = vadd.f32 %v3193_v19, %v1679_v1 }
 0x3d0   : > { %v1736_v3 = vadd.f32 %v3190_v17, %v1674_v62  ;;  %v2374_v16 = vpop.f32.mrb[58].mxu0 }
 0x3d1   : > { %1769 = vst [vmem:[%s3296_s29 + $0xc8] sm:$0xff] %v1737_v0  ;;  %v1689_v11 = vadd.f32 %v2374_v16, %v3288_v33  ;;  %v1683_v7 = vpop.f32.mrb[59].mxu0 }
 0x3d2   : > { %1768 = vst [vmem:[%s3296_s29 + $0xc0] sm:$0xff] %v1736_v3  ;;  %v1684_v14 = vadd.f32 %v3288_v33, %v1683_v7 }
 0x3d3   : > { %v1739_v5 = vadd.f32 %v3199_v23, %v1689_v11 }
 0x3d4   : > { %v1738_v6 = vadd.f32 %v3197_v21, %v1684_v14  ;;  %v2377_v9 = vpop.f32.mrb[60].mxu0 }
 0x3d5   : > { %1771 = vst [vmem:[%s3296_s29 + $0xd8] sm:$0xff] %v1739_v5  ;;  %v1699_v17 = vadd.f32 %v2377_v9, %v3288_v33  ;;  %v1693_v19 = vpop.f32.mrb[61].mxu0 }
 0x3d6   : > { %1770 = vst [vmem:[%s3296_s29 + $0xd0] sm:$0xff] %v1738_v6  ;;  %v1694_v12 = vadd.f32 %v3288_v33, %v1693_v19 }
 0x3d7   : > { %v1741_v22 = vadd.f32 %v3205_v25, %v1699_v17 }
 0x3d8   : > { %v1740_v20 = vadd.f32 %v3203_v24, %v1694_v12  ;;  %v2380_v13 = vpop.f32.mrb[64].mxu1 }
 0x3d9   : > { %1773 = vst [vmem:[%s3296_s29 + $0xe8] sm:$0xff] %v1741_v22  ;;  %v1709_v21 = vadd.f32 %v2380_v13, %v3288_v33  ;;  %v1703_v23 = vpop.f32.mrb[65].mxu1 }
 0x3da   : > { %1772 = vst [vmem:[%s3296_s29 + $0xe0] sm:$0xff] %v1740_v20  ;;  %v1704_v15 = vadd.f32 %v3288_v33, %v1703_v23 }
 0x3db   : > { %v1743_v18 = vadd.f32 %v3211_v27, %v1709_v21 }
 0x3dc   : > { %v1742_v24 = vadd.f32 %v3209_v49, %v1704_v15 }
 0x3dd   : > { %1775 = vst [vmem:[%s3296_s29 + $0xf8] sm:$0xff] %v1743_v18 }
 0x3de   : > { %1774 = vst [vmem:[%s3296_s29 + $0xf0] sm:$0xff] %v1742_v24 }
 0x3df   : > { %2695 = shalt.err (!%p2692_p3)
}
 0x3e0   : > { %s2696_s24 = scalar_lea.hbm %s3392_s21, 4096  ;;  %s2700_s14 = scalar_lea.hbm %s3451_s9, 8192 }
 0x3e1   : > { %p2697_p4 = scmp.ne.s32.totalorder %s3392_s21, %s2696_s24  ;;  %p2701_p9 = scmp.lt.u32.totalorder %s3392_s21, %s3451_s9 }
 0x3e2   : > { %p2702_p10 = scmp.lt.u32.totalorder %s2700_s14, %s2696_s24  ;;  %p2704_p12 = scmp.lt.u32.totalorder %s2696_s24, %s3392_s21 }
 0x3e3   : > { %p2698_p7 = pnand %p2697_p4, %p2837_p5 }
 0x3e4   : > { %p2703_p11 = por %p2702_p10, %p2701_p9 }
 0x3e5   : > { %p2699_p8 = pneg %p2698_p7 }
 0x3e6   : > { %p2705_p13 = por %p2704_p12, %p2703_p11 }
 0x3e8   : > { %p2706_p0 = pnand %p2705_p13, %p2699_p8 }
 0x3ea   : > { %2709 = shalt.err (!%p2706_p0)
}
 0x3eb   : > { %s2747_s22 = smov 128   ;;  %s2748_s23 = smov 8  }
 0x3ec   : > { %2449 = dma.vmem_to_hbm [thread:$0]  (%p2837_p5), %s3394_s27, 4096, %s3392_s21, %s3401_s13, %s2747_s22, %s2747_s22, %s2748_s23  }
 0x3ed PF: > { %p2455_p1 = scmp.ge.s32.totalorder %s2744_s12, 2  ;;  %s1805_s25 = sand.u32 1, %s2732_s30  }
 0x3ee   : > { %s1806_s26 = scalar_lea.sflag [#allocation3], %s1805_s25 }
 0x3ef   : > { %p2452_p2 = pnand %p2455_p1, %p2841_p6 }
 0x3f1   : > { %2727 = dma.done.wait (!%p2452_p2), %s1806_s26, 4096  }
 0x3f2   : > { %2729 = vsyncadd (!%p2452_p2), %s1806_s26, 4294963200  ;;  %p19_p3 = scmp.ge.s32.totalorder %s2824_s15, 4   ;;  %s3454_s30 = smov %s2736_s10 }
 0x3f3   : > { %s3455_s10 = smov %s2740_s11  ;;  %s3456_s11 = smov %s2835_s18 }
 0x3f4   : > { %s3457_s12 = smov %s2824_s15  ;;  %21 = sbr.rel (!%p19_p3) target bundleno = 3 (0x3), region = 91 }
 0x3fb   :  { %1811 = vsyncpa [#allocation3], 1 }
 0x3fc   :  { %1813 = vsyncpa [#allocation3 + $0x1], 1 }

</bundles_post_ra>
